<compile_context>
chip_gen: v6e
topology: v6e:2x2x1
jax: 0.10.0
libtpu: 0.0.40
codegen_flags: <defaults>
</compile_context>

<pallas_src>
import jax
import jax.numpy as jnp
from jax.experimental import pallas as pl
from jax.experimental.pallas import tpu as pltpu

BN_EPS = 1e-5
LANE = 128


def adv_mlp_kernel(x_ref, w1_ref, w2_ref, w3_ref, w4_ref, vec_ref, o_ref):
    # vec_ref rows: 0=gamma1, 1=beta1, 2=gamma2, 3=beta2, 4=gamma3, 5=beta3,
    #               6=b4 (lane-padded to 128), 7=unused
    vecs = vec_ref[...]                      # (8, 128) f32 -- one vreg tile
    H = w1_ref.shape[1]                      # hidden width (64)

    def mm(h_bf16, w_ref):
        # bf16 x bf16 -> f32 accumulation on the MXU.
        return jnp.dot(h_bf16, w_ref[...], preferred_element_type=jnp.float32)

    def bn_relu_fold(h, g, be):
        # Train-mode BatchNorm1d folded into a single scale/shift FMA.
        # (The preceding Linear bias is mathematically cancelled by the mean
        #  subtraction, so it is never added in the first place.)
        mean = jnp.mean(h, axis=0, keepdims=True)
        ex2 = jnp.mean(h * h, axis=0, keepdims=True)
        var = ex2 - mean * mean
        scale = g * jax.lax.rsqrt(var + BN_EPS)
        shift = be - mean * scale
        return jnp.maximum(h * scale + shift, 0.0)

    h = mm(x_ref[...], w1_ref)                                   # (B, H) f32
    h = bn_relu_fold(h, vecs[0:1, :H], vecs[1:2, :H])
    h = mm(h.astype(jnp.bfloat16), w2_ref)
    h = bn_relu_fold(h, vecs[2:3, :H], vecs[3:4, :H])
    h = mm(h.astype(jnp.bfloat16), w3_ref)
    h = bn_relu_fold(h, vecs[4:5, :H], vecs[5:6, :H])
    # Final projection: lane-dense (B, 128) store; padded columns are zero.
    o_ref[...] = mm(h.astype(jnp.bfloat16), w4_ref) + vecs[6:7, :]


def adv_forward(x, params):
    """x: [B, input_dim] float32. params: flat tuple of 14 arrays (see init_params)."""
    (W1, b1, g1, be1, W2, b2, g2, be2, W3, b3, g3, be3, W4, b4) = params
    del b1, b2, b3  # cancelled exactly by BatchNorm mean subtraction
    B = x.shape[0]
    out_dim = W4.shape[1]

    def lane_pad(v):
        return jnp.pad(v, ((0, 0), (0, LANE - v.shape[-1])))

    # Pack every small per-feature vector into one lane-dense (8, 128) f32 slab.
    vecs = jnp.concatenate(
        [lane_pad(g1), lane_pad(be1),
         lane_pad(g2), lane_pad(be2),
         lane_pad(g3), lane_pad(be3),
         lane_pad(b4.astype(jnp.float32)),
         jnp.zeros((1, LANE), jnp.float32)], axis=0)

    # bf16 MXU operands (cast once in the wrapper); final projection padded to
    # 128 output lanes so the kernel's store is unmasked.
    x_bf = x.astype(jnp.bfloat16)
    w1 = W1.astype(jnp.bfloat16)
    w2 = W2.astype(jnp.bfloat16)
    w3 = W3.astype(jnp.bfloat16)
    w4 = lane_pad(W4).astype(jnp.bfloat16)

    vmem = pl.BlockSpec(memory_space=pltpu.MemorySpace.VMEM)
    out = pl.pallas_call(
        adv_mlp_kernel,
        out_shape=jax.ShapeDtypeStruct((B, LANE), jnp.float32),
        in_specs=[vmem] * 6,
        out_specs=vmem,
    )(x_bf, w1, w2, w3, w4, vecs)

    out = out[:, :out_dim]
    # PyTorch: if output_dim == 1 -> .squeeze()
    if out_dim == 1:
        out = jnp.squeeze(out)
    return out


def init_params(key, input_dim=64, hidden_dim=64, output_dim=10, hidden_layers=3):
    """Deterministic synthetic parameters matching Adv.__init__ shapes.

    Returns a flat tuple:
      (W1, b1, g1, beta1, W2, b2, g2, beta2, W3, b3, g3, beta3, W4, b4)
    Linear weights are [in_dim, out_dim]; biases/BN params are [1, dim].
    """
    params = []
    for i in range(hidden_layers + 1):
        prev = input_dim if i == 0 else hidden_dim
        out = output_dim if i == hidden_layers else hidden_dim
        key, kw, kb = jax.random.split(key, 3)
        bound = 1.0 / jnp.sqrt(prev)
        W = jax.random.uniform(kw, (prev, out), jnp.float32, -bound, bound)
        b = jax.random.uniform(kb, (1, out), jnp.float32, -bound, bound)
        params += [W, b]
        if i != hidden_layers:
            # BatchNorm1d(64): gamma=1, beta=0 at init
            params += [jnp.ones((1, hidden_dim), jnp.float32),
                       jnp.zeros((1, hidden_dim), jnp.float32)]
    return tuple(params)


def adv_reference(x, params):
    """Pure-JAX reference replicating the PyTorch forward (BN in train mode),
    using the same bf16-operand / f32-accumulation matmul convention as the kernel."""
    (W1, b1, g1, be1, W2, b2, g2, be2, W3, b3, g3, be3, W4, b4) = params
    del b1, b2, b3  # cancelled by BN mean subtraction (mathematically exact)

    def mm(h, W):
        return jnp.dot(h.astype(jnp.bfloat16), W.astype(jnp.bfloat16),
                       preferred_element_type=jnp.float32)

    def bn_relu(h, g, be):
        m = jnp.mean(h, axis=0, keepdims=True)
        v = jnp.mean(h * h, axis=0, keepdims=True) - m * m
        scale = g * jax.lax.rsqrt(v + BN_EPS)
        return jnp.maximum(h * scale + (be - m * scale), 0.0)

    h = bn_relu(mm(x, W1), g1, be1)
    h = bn_relu(mm(h, W2), g2, be2)
    h = bn_relu(mm(h, W3), g3, be3)
    return mm(h, W4) + b4


if __name__ == "__main__":
    key = jax.random.PRNGKey(0)
    kx, kp = jax.random.split(key)

    B, INPUT_DIM, HIDDEN_DIM, OUTPUT_DIM = 8, 64, 64, 10
    x = jax.random.normal(kx, (B, INPUT_DIM), jnp.float32)
    params = init_params(kp, INPUT_DIM, HIDDEN_DIM, OUTPUT_DIM, hidden_layers=3)

    out = adv_forward(x, params)
    out = jax.block_until_ready(out)

    ref = adv_reference(x, params)
    assert out.shape == (B, OUTPUT_DIM), out.shape
    assert jnp.allclose(out, ref, atol=1e-3, rtol=1e-3), float(jnp.max(jnp.abs(out - ref)))

    print("KERNEL_OK")
</pallas_src>

<mosaic_0001>
module attributes {stable_mosaic.version = 11 : i64} {
  func.func @adv_mlp_kernel(%arg0: memref<8x64xbf16, #tpu.memory_space<vmem>>, %arg1: memref<64x64xbf16, #tpu.memory_space<vmem>>, %arg2: memref<64x64xbf16, #tpu.memory_space<vmem>>, %arg3: memref<64x64xbf16, #tpu.memory_space<vmem>>, %arg4: memref<64x128xbf16, #tpu.memory_space<vmem>>, %arg5: memref<8x128xf32, #tpu.memory_space<vmem>>, %arg6: memref<8x128xf32, #tpu.memory_space<vmem>>) attributes {dimension_semantics = [], scalar_prefetch = 0 : i64, scratch_operands = 0 : i64, tpu.core_type = #tpu.core_type<tc>} {
    %c0 = arith.constant 0 : index
    %c0_0 = arith.constant 0 : index
    %0 = vector.load %arg5[%c0, %c0_0] : memref<8x128xf32, #tpu.memory_space<vmem>>, vector<8x128xf32>
    %c0_1 = arith.constant 0 : index
    %c0_2 = arith.constant 0 : index
    %1 = vector.load %arg0[%c0_1, %c0_2] : memref<8x64xbf16, #tpu.memory_space<vmem>>, vector<8x64xbf16>
    %c0_3 = arith.constant 0 : index
    %c0_4 = arith.constant 0 : index
    %2 = vector.load %arg1[%c0_3, %c0_4] : memref<64x64xbf16, #tpu.memory_space<vmem>>, vector<64x64xbf16>
    %cst = arith.constant dense<0.000000e+00> : vector<8x64xf32>
    %3 = tpu.matmul %1, %2, %cst {dimension_numbers = #tpu.dot_dimension_numbers<[1], [0], [0], [1], [0, 0, 1, 1], [], []>} : vector<8x64xbf16>, vector<64x64xbf16>, vector<8x64xf32> -> vector<8x64xf32>
    %4 = vector.extract_strided_slice %0 {offsets = [0, 0], sizes = [1, 64], strides = [1, 1]} : vector<8x128xf32> to vector<1x64xf32>
    %5 = vector.extract_strided_slice %0 {offsets = [1, 0], sizes = [1, 64], strides = [1, 1]} : vector<8x128xf32> to vector<1x64xf32>
    %cst_5 = arith.constant dense<0.000000e+00> : vector<64xf32>
    %6 = vector.multi_reduction <add>, %3, %cst_5 [0] : vector<8x64xf32> to vector<64xf32>
    %7 = vector.shape_cast %6 : vector<64xf32> to vector<1x64xf32>
    %cst_6 = arith.constant 8.000000e+00 : f32
    %8 = vector.broadcast %cst_6 : f32 to vector<1x64xf32>
    %9 = arith.divf %7, %8 : vector<1x64xf32>
    %10 = arith.mulf %3, %3 : vector<8x64xf32>
    %cst_7 = arith.constant dense<0.000000e+00> : vector<64xf32>
    %11 = vector.multi_reduction <add>, %10, %cst_7 [0] : vector<8x64xf32> to vector<64xf32>
    %12 = vector.shape_cast %11 : vector<64xf32> to vector<1x64xf32>
    %cst_8 = arith.constant 8.000000e+00 : f32
    %13 = vector.broadcast %cst_8 : f32 to vector<1x64xf32>
    %14 = arith.divf %12, %13 : vector<1x64xf32>
    %15 = arith.mulf %9, %9 : vector<1x64xf32>
    %16 = arith.subf %14, %15 : vector<1x64xf32>
    %cst_9 = arith.constant 9.99999974E-6 : f32
    %17 = vector.broadcast %cst_9 : f32 to vector<1x64xf32>
    %18 = arith.addf %16, %17 : vector<1x64xf32>
    %19 = math.rsqrt %18 : vector<1x64xf32>
    %20 = arith.mulf %4, %19 : vector<1x64xf32>
    %21 = arith.mulf %9, %20 : vector<1x64xf32>
    %22 = arith.subf %5, %21 : vector<1x64xf32>
    %23 = vector.broadcast %20 : vector<1x64xf32> to vector<8x64xf32>
    %24 = arith.mulf %3, %23 : vector<8x64xf32>
    %25 = vector.broadcast %22 : vector<1x64xf32> to vector<8x64xf32>
    %26 = arith.addf %24, %25 : vector<8x64xf32>
    %cst_10 = arith.constant 0.000000e+00 : f32
    %27 = vector.broadcast %cst_10 : f32 to vector<8x64xf32>
    %28 = arith.maximumf %26, %27 : vector<8x64xf32>
    %29 = arith.truncf %28 : vector<8x64xf32> to vector<8x64xbf16>
    %c0_11 = arith.constant 0 : index
    %c0_12 = arith.constant 0 : index
    %30 = vector.load %arg2[%c0_11, %c0_12] : memref<64x64xbf16, #tpu.memory_space<vmem>>, vector<64x64xbf16>
    %cst_13 = arith.constant dense<0.000000e+00> : vector<8x64xf32>
    %31 = tpu.matmul %29, %30, %cst_13 {dimension_numbers = #tpu.dot_dimension_numbers<[1], [0], [0], [1], [0, 0, 1, 1], [], []>} : vector<8x64xbf16>, vector<64x64xbf16>, vector<8x64xf32> -> vector<8x64xf32>
    %32 = vector.extract_strided_slice %0 {offsets = [2, 0], sizes = [1, 64], strides = [1, 1]} : vector<8x128xf32> to vector<1x64xf32>
    %33 = vector.extract_strided_slice %0 {offsets = [3, 0], sizes = [1, 64], strides = [1, 1]} : vector<8x128xf32> to vector<1x64xf32>
    %cst_14 = arith.constant dense<0.000000e+00> : vector<64xf32>
    %34 = vector.multi_reduction <add>, %31, %cst_14 [0] : vector<8x64xf32> to vector<64xf32>
    %35 = vector.shape_cast %34 : vector<64xf32> to vector<1x64xf32>
    %cst_15 = arith.constant 8.000000e+00 : f32
    %36 = vector.broadcast %cst_15 : f32 to vector<1x64xf32>
    %37 = arith.divf %35, %36 : vector<1x64xf32>
    %38 = arith.mulf %31, %31 : vector<8x64xf32>
    %cst_16 = arith.constant dense<0.000000e+00> : vector<64xf32>
    %39 = vector.multi_reduction <add>, %38, %cst_16 [0] : vector<8x64xf32> to vector<64xf32>
    %40 = vector.shape_cast %39 : vector<64xf32> to vector<1x64xf32>
    %cst_17 = arith.constant 8.000000e+00 : f32
    %41 = vector.broadcast %cst_17 : f32 to vector<1x64xf32>
    %42 = arith.divf %40, %41 : vector<1x64xf32>
    %43 = arith.mulf %37, %37 : vector<1x64xf32>
    %44 = arith.subf %42, %43 : vector<1x64xf32>
    %cst_18 = arith.constant 9.99999974E-6 : f32
    %45 = vector.broadcast %cst_18 : f32 to vector<1x64xf32>
    %46 = arith.addf %44, %45 : vector<1x64xf32>
    %47 = math.rsqrt %46 : vector<1x64xf32>
    %48 = arith.mulf %32, %47 : vector<1x64xf32>
    %49 = arith.mulf %37, %48 : vector<1x64xf32>
    %50 = arith.subf %33, %49 : vector<1x64xf32>
    %51 = vector.broadcast %48 : vector<1x64xf32> to vector<8x64xf32>
    %52 = arith.mulf %31, %51 : vector<8x64xf32>
    %53 = vector.broadcast %50 : vector<1x64xf32> to vector<8x64xf32>
    %54 = arith.addf %52, %53 : vector<8x64xf32>
    %cst_19 = arith.constant 0.000000e+00 : f32
    %55 = vector.broadcast %cst_19 : f32 to vector<8x64xf32>
    %56 = arith.maximumf %54, %55 : vector<8x64xf32>
    %57 = arith.truncf %56 : vector<8x64xf32> to vector<8x64xbf16>
    %c0_20 = arith.constant 0 : index
    %c0_21 = arith.constant 0 : index
    %58 = vector.load %arg3[%c0_20, %c0_21] : memref<64x64xbf16, #tpu.memory_space<vmem>>, vector<64x64xbf16>
    %cst_22 = arith.constant dense<0.000000e+00> : vector<8x64xf32>
    %59 = tpu.matmul %57, %58, %cst_22 {dimension_numbers = #tpu.dot_dimension_numbers<[1], [0], [0], [1], [0, 0, 1, 1], [], []>} : vector<8x64xbf16>, vector<64x64xbf16>, vector<8x64xf32> -> vector<8x64xf32>
    %60 = vector.extract_strided_slice %0 {offsets = [4, 0], sizes = [1, 64], strides = [1, 1]} : vector<8x128xf32> to vector<1x64xf32>
    %61 = vector.extract_strided_slice %0 {offsets = [5, 0], sizes = [1, 64], strides = [1, 1]} : vector<8x128xf32> to vector<1x64xf32>
    %cst_23 = arith.constant dense<0.000000e+00> : vector<64xf32>
    %62 = vector.multi_reduction <add>, %59, %cst_23 [0] : vector<8x64xf32> to vector<64xf32>
    %63 = vector.shape_cast %62 : vector<64xf32> to vector<1x64xf32>
    %cst_24 = arith.constant 8.000000e+00 : f32
    %64 = vector.broadcast %cst_24 : f32 to vector<1x64xf32>
    %65 = arith.divf %63, %64 : vector<1x64xf32>
    %66 = arith.mulf %59, %59 : vector<8x64xf32>
    %cst_25 = arith.constant dense<0.000000e+00> : vector<64xf32>
    %67 = vector.multi_reduction <add>, %66, %cst_25 [0] : vector<8x64xf32> to vector<64xf32>
    %68 = vector.shape_cast %67 : vector<64xf32> to vector<1x64xf32>
    %cst_26 = arith.constant 8.000000e+00 : f32
    %69 = vector.broadcast %cst_26 : f32 to vector<1x64xf32>
    %70 = arith.divf %68, %69 : vector<1x64xf32>
    %71 = arith.mulf %65, %65 : vector<1x64xf32>
    %72 = arith.subf %70, %71 : vector<1x64xf32>
    %cst_27 = arith.constant 9.99999974E-6 : f32
    %73 = vector.broadcast %cst_27 : f32 to vector<1x64xf32>
    %74 = arith.addf %72, %73 : vector<1x64xf32>
    %75 = math.rsqrt %74 : vector<1x64xf32>
    %76 = arith.mulf %60, %75 : vector<1x64xf32>
    %77 = arith.mulf %65, %76 : vector<1x64xf32>
    %78 = arith.subf %61, %77 : vector<1x64xf32>
    %79 = vector.broadcast %76 : vector<1x64xf32> to vector<8x64xf32>
    %80 = arith.mulf %59, %79 : vector<8x64xf32>
    %81 = vector.broadcast %78 : vector<1x64xf32> to vector<8x64xf32>
    %82 = arith.addf %80, %81 : vector<8x64xf32>
    %cst_28 = arith.constant 0.000000e+00 : f32
    %83 = vector.broadcast %cst_28 : f32 to vector<8x64xf32>
    %84 = arith.maximumf %82, %83 : vector<8x64xf32>
    %85 = arith.truncf %84 : vector<8x64xf32> to vector<8x64xbf16>
    %c0_29 = arith.constant 0 : index
    %c0_30 = arith.constant 0 : index
    %86 = vector.load %arg4[%c0_29, %c0_30] : memref<64x128xbf16, #tpu.memory_space<vmem>>, vector<64x128xbf16>
    %cst_31 = arith.constant dense<0.000000e+00> : vector<8x128xf32>
    %87 = tpu.matmul %85, %86, %cst_31 {dimension_numbers = #tpu.dot_dimension_numbers<[1], [0], [0], [1], [0, 0, 1, 1], [], []>} : vector<8x64xbf16>, vector<64x128xbf16>, vector<8x128xf32> -> vector<8x128xf32>
    %88 = vector.extract_strided_slice %0 {offsets = [6, 0], sizes = [1, 128], strides = [1, 1]} : vector<8x128xf32> to vector<1x128xf32>
    %89 = vector.broadcast %88 : vector<1x128xf32> to vector<8x128xf32>
    %90 = arith.addf %87, %89 : vector<8x128xf32>
    %c0_32 = arith.constant 0 : index
    %c0_33 = arith.constant 0 : index
    %91 = vector.load %arg6[%c0_32, %c0_33] : memref<8x128xf32, #tpu.memory_space<vmem>>, vector<8x128xf32>
    tpu.vector_store %arg6[%c0_32, %c0_33], %90 {strides = array<i32>} : memref<8x128xf32, #tpu.memory_space<vmem>>, vector<8x128xf32>,
    return
  }
}

</mosaic_0001>

<bundles_post_ra>
// kernel: tpu_custom_call.1
= control target key start
LH: loop header
LB: loop body
LE: loop exit
PB: predicated region body
PF: predicated region fallthrough
CT: control target
= control target key end

     0   :  { %11 = vsyncpa [#allocation3], 0  ;;  %s912_s0 = inlined_call_operand.hbm [shape: bf16[8,64], index: 0, kind: input, shape index: {}]   ;;  %s913_s1 = inlined_call_operand.hbm [shape: bf16[64,64], index: 1, kind: input, shape index: {}]   ;;  %s914_s2 = inlined_call_operand.hbm [shape: bf16[64,64], index: 2, kind: input, shape index: {}]   ;;  %s915_s3 = inlined_call_operand.hbm [shape: bf16[64,64], index: 3, kind: input, shape index: {}]   ;;  %s916_s4 = inlined_call_operand.hbm [shape: bf16[64,128], index: 4, kind: input, shape index: {}]   ;;  %s917_s5 = inlined_call_operand.vmem [shape: f32[8,128], index: 5, kind: input, shape index: {}]   ;;  %s918_s6 = inlined_call_operand.hbm [shape: f32[8,128], index: 6, kind: output, shape index: {}]  }
   0x1   :  { %12 = vsyncpa [#allocation6], 0 }
   0x2   :  { %13 = vsyncpa [#allocation9], 0 }
   0x3   :  { %14 = vsyncpa [#allocation4], 0  ;;  %s782_s21 = smov [#allocation5]  }
   0x4   :  { %s30_s22 = sshll.u32 %s782_s21, 4  ;;  %s31_s22 = int_to_ptr.vmem [resolvable:$true] %s30_s22 }
   0x5   :  { %s662_s23 = scalar_lea.vmem %s31_s22, 512  ;;  %p667_p1 = scmp.lt.s32.totalorder %s31_s22, %s31_s22 }
   0x6   :  { %p663_p0 = scmp.ne.s32.totalorder %s31_s22, %s662_s23  ;;  %p668_p2 = scmp.lt.s32.totalorder %s662_s23, %s662_s23 }
   0x8   :  { %p669_p3 = por %p668_p2, %p667_p1 }
   0xa   :  { %p670_p4 = pnand %p669_p3, %p663_p0 }
   0xc   :  { %673 = shalt.err (!%p670_p4)
}
   0xd   :  { %s783_s24 = smov 64   ;;  %s784_s25 = smov 4  }
   0xe   :  { %36 = dma.hbm_to_vmem [thread:$0]  %s913_s1, 512, %s31_s22, [#allocation6], %s783_s24, %s783_s24, %s784_s25  }
   0xf   :  { %s785_s28 = smov [#allocation8]   ;;  %s786_s30 = smov [#allocation2]  }
  0x10   :  { %s54_s29 = sshll.u32 %s785_s28, 4  ;;  %s21_s7 = sshll.u32 %s786_s30, 4  ;;  %s55_s29 = int_to_ptr.vmem [resolvable:$true] %s54_s29  ;;  %s22_s7 = int_to_ptr.vmem [resolvable:$true] %s21_s7 }
  0x11   :  { %s682_s8 = scalar_lea.vmem %s55_s29, 512  ;;  %p687_p6 = scmp.lt.s32.totalorder %s55_s29, %s55_s29 }
  0x12   :  { %p683_p5 = scmp.ne.s32.totalorder %s55_s29, %s682_s8  ;;  %p688_p7 = scmp.lt.s32.totalorder %s682_s8, %s682_s8 }
  0x14   :  { %p689_p8 = por %p688_p7, %p687_p6 }
  0x16   :  { %p690_p9 = pnand %p689_p8, %p683_p5 }
  0x18   :  { %693 = shalt.err (!%p690_p9)
}
  0x19   :  { %60 = dma.hbm_to_vmem [thread:$0]  %s915_s3, 512, %s55_s29, [#allocation9], %s783_s24, %s783_s24, %s784_s25  }
  0x1a   :  { %s702_s1 = scalar_lea.vmem %s22_s7, 64  ;;  %p707_p11 = scmp.lt.s32.totalorder %s22_s7, %s22_s7 }
  0x1b   :  { %p703_p10 = scmp.ne.s32.totalorder %s22_s7, %s702_s1  ;;  %p708_p12 = scmp.lt.s32.totalorder %s702_s1, %s702_s1 }
  0x1d   :  { %p709_p13 = por %p708_p12, %p707_p11 }
  0x1f   :  { %p710_p0 = pnand %p709_p13, %p703_p10 }
  0x21   :  { %713 = shalt.err (!%p710_p0)
}
  0x22   :  { %24 = dma.hbm_to_vmem [thread:$0]  %s912_s0, 64, %s22_s7, [#allocation3]  }
  0x23   :  { %s787_s13 = smov [#allocation7]   ;;  %s788_s15 = smov [#allocation10]  }
  0x24   :  { %s42_s14 = sshll.u32 %s787_s13, 4  ;;  %s66_s16 = sshll.u32 %s788_s15, 4  ;;  %s43_s14 = int_to_ptr.vmem [resolvable:$true] %s42_s14  ;;  %s67_s16 = int_to_ptr.vmem [resolvable:$true] %s66_s16 }
  0x25   :  { %s722_s17 = scalar_lea.vmem %s43_s14, 512  ;;  %p727_p2 = scmp.lt.s32.totalorder %s43_s14, %s43_s14 }
  0x26   :  { %p723_p1 = scmp.ne.s32.totalorder %s43_s14, %s722_s17  ;;  %p728_p3 = scmp.lt.s32.totalorder %s722_s17, %s722_s17 }
  0x28   :  { %p729_p4 = por %p728_p3, %p727_p2 }
  0x2a   :  { %p730_p5 = pnand %p729_p4, %p723_p1 }
  0x2c   :  { %733 = shalt.err (!%p730_p5)
}
  0x2d   :  { %48 = dma.hbm_to_vmem [thread:$0]  %s914_s2, 512, %s43_s14, [#allocation6], %s783_s24, %s783_s24, %s784_s25  }
  0x2e   :  { %s742_s0 = scalar_lea.vmem %s67_s16, 512  ;;  %p747_p7 = scmp.lt.s32.totalorder %s67_s16, %s67_s16 }
  0x2f   :  { %p743_p6 = scmp.ne.s32.totalorder %s67_s16, %s742_s0  ;;  %p748_p8 = scmp.lt.s32.totalorder %s742_s0, %s742_s0 }
  0x31   :  { %p749_p9 = por %p748_p8, %p747_p7 }
  0x33   :  { %p750_p10 = pnand %p749_p9, %p743_p6 }
  0x35   :  { %753 = shalt.err (!%p750_p10)
}
  0x36   :  { %72 = dma.hbm_to_vmem [thread:$0]  %s916_s4, 512, %s67_s16, [#allocation9], %s783_s24, %s783_s24, %s784_s25  }
  0x37   :  { %774 = dma.done.wait [#allocation3], 64  }
  0x38   :  { %775 = vsyncadd [#allocation3], 4294967232 }
  0x39   :  { %776 = dma.done.wait [#allocation6], 1024  }
  0x3a   :  { %777 = vsyncadd [#allocation6], 4294966272 }
  0x3b   :  { %778 = dma.done.wait [#allocation9], 1024  }
  0x3c   :  { %779 = vsyncadd [#allocation9], 4294966272  ;;  %v789_v0 = vmov 0.0   ;;  %vm790_vm0 = vmmov 0   ;;  %v632_v1 = vld [vmem:[#allocation5 + $0x18] sm:$0xff]   ;;  %v633_v2 = vld [vmem:[#allocation5 + $0x10] sm:$0xff]   ;;  %v197_v34 = vlaneseq }
  0x3d   :  { %574 = vmatprep.subr.bf16.mxu0 %v789_v0  ;;  %582 = vmatprep.mubr.msk.bf16.mxu0 %vm790_vm0, %v789_v0  ;;  %v634_v3 = vld [vmem:[#allocation5 + $0x8] sm:$0xff]   ;;  %v635_v4 = vld [vmem:[#allocation5] sm:$0xff]   ;;  %v92_v5 = vld [vmem:[#allocation2] sm:$0xf]  ;;  %vm125_vm1 = vcmask 523264  }
  0x3e   :  { %586 = vmatprep.subr.bf16.mxu1 %v789_v0  ;;  %594 = vmatprep.mubr.msk.bf16.mxu1 %vm790_vm0, %v789_v0  ;;  %v636_v6 = vld [vmem:[#allocation7 + $0x18] sm:$0xff]   ;;  %v637_v7 = vld [vmem:[#allocation7 + $0x10] sm:$0xff]   ;;  %v638_v8 = vld [vmem:[#allocation7 + $0x8] sm:$0xff]   ;;  %v873_v35 = vshrl.u32 %v197_v34, 7 }
  0x3f   :  { %575 = vmatpush3.bf16.msra.mxu0 %v632_v1  ;;  %587 = vmatpush3.bf16.msra.mxu1 %v636_v6  ;;  %v639_v9 = vld [vmem:[#allocation7] sm:$0xff]   ;;  %v640_v50 = vld [vmem:[#allocation8 + $0x18] sm:$0xff]   ;;  %v641_v51 = vld [vmem:[#allocation8 + $0x10] sm:$0xff]  }
  0x40   :  { %576 = vmatprep.subr.bf16.mxu0 %v789_v0  ;;  %588 = vmatprep.subr.bf16.mxu1 %v789_v0  ;;  %v878_v36 = vld [vmem:[%s917_s5] sm:$0xff]  ;;  %v199_v39 = vsub.s32 0, %v873_v35  ;;  %v204_v43 = vsub.s32 1, %v873_v35  ;;  %v642_v52 = vld [vmem:[#allocation8 + $0x8] sm:$0xff]   ;;  %s791_s5 = smov [#allocation11]  }
  0x41   :  { %v643_v53 = vld [vmem:[#allocation8] sm:$0xff]   ;;  %s523_s21 = sshll.u32 %s791_s5, 4  ;;  %s524_s21 = int_to_ptr.vmem [resolvable:$true] %s523_s21 }
  0x42   :  { %s754_s22 = scalar_lea.vmem %s524_s21, 128  ;;  %p759_p12 = scmp.lt.s32.totalorder %s524_s21, %s524_s21 }
  0x43   :  { %577 = vmatpush3.bf16.msra.mxu0 %v633_v2  ;;  %589 = vmatpush3.bf16.msra.mxu1 %v637_v7  ;;  %p755_p11 = scmp.ne.s32.totalorder %s524_s21, %s754_s22  ;;  %p760_p13 = scmp.lt.s32.totalorder %s754_s22, %s754_s22 }
  0x44   :  { %578 = vmatprep.subr.bf16.mxu0 %v789_v0  ;;  %590 = vmatprep.subr.bf16.mxu1 %v789_v0 }
  0x45   :  { %p761_p0 = por %p760_p13, %p759_p12 }
  0x47   :  { %579 = vmatpush3.bf16.msra.mxu0 %v634_v3  ;;  %591 = vmatpush3.bf16.msra.mxu1 %v638_v8  ;;  %p762_p1 = pnand %p761_p0, %p755_p11 }
  0x48   :  { %580 = vmatprep.subr.bf16.mxu0 %v789_v0  ;;  %592 = vmatprep.subr.bf16.mxu1 %v789_v0 }
  0x4b   :  { %581 = vmatpush3.bf16.msra.mxu0 %v635_v4  ;;  %593 = vmatpush3.bf16.msra.mxu1 %v639_v9 }
  0x4c   :  { %598 = vmatprep.subr.bf16.mxu0 %v789_v0  ;;  %610 = vmatprep.subr.bf16.mxu1 %v789_v0 }
  0x4e   :  { %583 = vmatmul.mubr.msk.bf16.vlgmr.msra.gmra.mxu0 %vm125_vm1, %v92_v5 }
  0x4f   :  { %606 = vmatprep.mubr.msk.bf16.mxu0 %vm790_vm0, %v789_v0  ;;  %599 = vmatpush3.bf16.msra.mxu0 %v640_v50 }
  0x50   :  { %600 = vmatprep.subr.bf16.mxu0 %v789_v0 }
  0x53   :  { %601 = vmatpush3.bf16.msra.mxu0 %v641_v51 }
  0x54   :  { %602 = vmatprep.subr.bf16.mxu0 %v789_v0 }
  0x57   :  { %603 = vmatpush3.bf16.msra.mxu0 %v642_v52 }
  0x58   :  { %604 = vmatprep.subr.bf16.mxu0 %v789_v0 }
  0x5b   :  { %605 = vmatpush3.bf16.msra.mxu0 %v643_v53 }
 0x10e   :  { %v163_v10 = vpop.f32.mrf.mxu0 }
 0x10f   :  { %v169_v11 = vsel %vm125_vm1, %v163_v10, 0.0  ;;  %v178_v12 = vmul.f32 %v163_v10, %v163_v10 }
 0x110   :  { %v170_v13 = vrot.slane %v169_v11, 4  ;;  %v584_v14 = vpop.f32.mrf.mxu0 }
 0x111   :  { %v179_v15 = vsel %vm125_vm1, %v178_v12, 0.0 }
 0x112   :  { %v171_v16 = vadd.f32 %v170_v13, %v169_v11  ;;  %v180_v17 = vrot.slane %v179_v15, 4  ;;  %v166_v18 = vpop.f32.mrf.mxu0 }
 0x114   :  { %v172_v19 = vrot.slane %v171_v16, 2  ;;  %v181_v20 = vadd.f32 %v180_v17, %v179_v15  ;;  %v585_v21 = vpop.f32.mrf.mxu0  ;;  %v313_v17 = vsub.s32 2, %v873_v35 }
 0x115   :  { %v318_v21 = vsub.s32 3, %v873_v35 }
 0x116   :  { %v173_v22 = vadd.f32 %v172_v19, %v171_v16  ;;  %v182_v23 = vrot.slane %v181_v20, 2 }
 0x118   :  { %v174_v24 = vrot.slane %v173_v22, 1  ;;  %v183_v25 = vadd.f32 %v182_v23, %v181_v20 }
 0x11a   :  { %v175_v26 = vadd.f32 %v174_v24, %v173_v22  ;;  %v184_v27 = vrot.slane %v183_v25, 1 }
 0x11c   :  { %v177_v28 = vmul.f32 0.125, %v175_v26  ;;  %v185_v29 = vadd.f32 %v184_v27, %v183_v25 }
 0x11e   :  { %v186_v30 = vmul.f32 0.125, %v185_v29  ;;  %v187_v31 = vmul.f32 %v177_v28, %v177_v28  ;;  %v645_v29 = vld [vmem:[#allocation10 + $0x10] sm:$0xff]  }
 0x120   :  { %v188_v32 = vsub.f32 %v186_v30, %v187_v31  ;;  %v646_v30 = vld [vmem:[#allocation10 + $0x8] sm:$0xff]   ;;  %v647_v31 = vld [vmem:[#allocation10] sm:$0xff]  }
 0x122   :  { %v189_v33 = vadd.f32 1e-05, %v188_v32 }
 0x124   :  { %648 = vrsqrt.f32 %v189_v33 }
 0x131   :  { %v649_v37 = vpop.eup %648 }
 0x132   :  { %v191_v38 = vmul.f32 %v649_v37, %v878_v36 }
 0x134   :  { %v192_v40 = vmul.f32 %v191_v38, %v177_v28  ;;  %v200_v42 = vrot.slane %v191_v38, %v199_v39  ;;  %v644_v28 = vld [vmem:[#allocation10 + $0x18] sm:$0xff]  }
 0x136   :  { %v194_v41 = vrot.slane %v192_v40, 7  ;;  %v201_v45 = vmul.f32 %v200_v42, %v163_v10 }
 0x138   :  { %v196_v44 = vsub.f32 %v878_v36, %v194_v41 }
 0x13a   :  { %v205_v46 = vrot.slane %v196_v44, %v204_v43 }
 0x13c   :  { %v206_v47 = vadd.f32 %v205_v46, %v201_v45 }
 0x13e   :  { %v207_v48 = vmax.f32 %v206_v47, 0.0 }
 0x140   :  { %v208_v49 = vpack.c.bf16 %v207_v48, %v207_v48 }
 0x142   :  { %595 = vmatmul.mubr.msk.bf16.vlgmr.msra.gmra.mxu1 %vm125_vm1, %v208_v49 }
 0x143   :  { %618 = vmatprep.mubr.msk.bf16.mxu1 %vm790_vm0, %v789_v0  ;;  %611 = vmatpush3.bf16.msra.mxu1 %v644_v28 }
 0x144   :  { %612 = vmatprep.subr.bf16.mxu1 %v789_v0 }
 0x147   :  { %613 = vmatpush3.bf16.msra.mxu1 %v645_v29 }
 0x148   :  { %614 = vmatprep.subr.bf16.mxu1 %v789_v0 }
 0x14b   :  { %615 = vmatpush3.bf16.msra.mxu1 %v646_v30 }
 0x14c   :  { %616 = vmatprep.subr.bf16.mxu1 %v789_v0 }
 0x14f   :  { %617 = vmatpush3.bf16.msra.mxu1 %v647_v31 }
 0x202   :  { %v278_v54 = vpop.f32.mrf.mxu1 }
 0x203   :  { %v284_v55 = vsel %vm125_vm1, %v278_v54, 0.0  ;;  %v292_v56 = vmul.f32 %v278_v54, %v278_v54 }
 0x204   :  { %v285_v57 = vrot.slane %v284_v55, 4  ;;  %v596_v58 = vpop.f32.mrf.mxu1 }
 0x205   :  { %v293_v59 = vsel %vm125_vm1, %v292_v56, 0.0 }
 0x206   :  { %v286_v60 = vadd.f32 %v285_v57, %v284_v55  ;;  %v294_v61 = vrot.slane %v293_v59, 4  ;;  %v281_v62 = vpop.f32.mrf.mxu1 }
 0x208   :  { %v287_v63 = vrot.slane %v286_v60, 2  ;;  %v295_v1 = vadd.f32 %v294_v61, %v293_v59  ;;  %v597_v2 = vpop.f32.mrf.mxu1  ;;  %v427_v59 = vsub.s32 4, %v873_v35 }
 0x20a   :  { %v288_v3 = vadd.f32 %v287_v63, %v286_v60  ;;  %v296_v4 = vrot.slane %v295_v1, 2  ;;  %v432_v63 = vsub.s32 5, %v873_v35 }
 0x20c   :  { %v289_v5 = vrot.slane %v288_v3, 1  ;;  %v297_v6 = vadd.f32 %v296_v4, %v295_v1 }
 0x20e   :  { %v290_v7 = vadd.f32 %v289_v5, %v288_v3  ;;  %v298_v8 = vrot.slane %v297_v6, 1 }
 0x210   :  { %v291_v9 = vmul.f32 0.125, %v290_v7  ;;  %v299_v10 = vadd.f32 %v298_v8, %v297_v6  ;;  %v447_v7 = vsub.s32 6, %v873_v35 }
 0x212   :  { %v300_v11 = vmul.f32 0.125, %v299_v10  ;;  %v301_v12 = vmul.f32 %v291_v9, %v291_v9  ;;  %v448_v8 = vrot.slane %v878_v36, %v447_v7 }
 0x214   :  { %v302_v13 = vsub.f32 %v300_v11, %v301_v12 }
 0x216   :  { %v303_v14 = vadd.f32 1e-05, %v302_v13 }
 0x218   :  { %650 = vrsqrt.f32 %v303_v14 }
 0x225   :  { %v651_v15 = vpop.eup %650 }
 0x226   :  { %v305_v16 = vmul.f32 %v651_v15, %v878_v36 }
 0x228   :  { %v306_v18 = vmul.f32 %v305_v16, %v291_v9  ;;  %v314_v20 = vrot.slane %v305_v16, %v313_v17 }
 0x22a   :  { %v308_v19 = vrot.slane %v306_v18, 7  ;;  %v315_v23 = vmul.f32 %v314_v20, %v278_v54 }
 0x22c   :  { %v310_v22 = vsub.f32 %v878_v36, %v308_v19 }
 0x22e   :  { %v319_v24 = vrot.slane %v310_v22, %v318_v21 }
 0x230   :  { %v320_v25 = vadd.f32 %v319_v24, %v315_v23 }
 0x232   :  { %v321_v26 = vmax.f32 %v320_v25, 0.0 }
 0x234   :  { %v322_v27 = vpack.c.bf16 %v321_v26, %v321_v26 }
 0x236   :  { %607 = vmatmul.mubr.msk.bf16.vlgmr.msra.gmra.mxu0 %vm125_vm1, %v322_v27 }
 0x2f6   :  { %v392_v32 = vpop.f32.mrf.mxu0 }
 0x2f7   :  { %v398_v33 = vsel %vm125_vm1, %v392_v32, 0.0  ;;  %v406_v34 = vmul.f32 %v392_v32, %v392_v32 }
 0x2f8   :  { %v399_v37 = vrot.slane %v398_v33, 4  ;;  %v608_v38 = vpop.f32.mrf.mxu0 }
 0x2f9   :  { %v407_v39 = vsel %vm125_vm1, %v406_v34, 0.0 }
 0x2fa   :  { %v400_v40 = vadd.f32 %v399_v37, %v398_v33  ;;  %v408_v41 = vrot.slane %v407_v39, 4  ;;  %v395_v42 = vpop.f32.mrf.mxu0 }
 0x2fc   :  { %v401_v43 = vrot.slane %v400_v40, 2  ;;  %v409_v44 = vadd.f32 %v408_v41, %v407_v39  ;;  %v609_v45 = vpop.f32.mrf.mxu0 }
 0x2fe   :  { %v402_v46 = vadd.f32 %v401_v43, %v400_v40  ;;  %v410_v47 = vrot.slane %v409_v44, 2 }
 0x300   :  { %v403_v48 = vrot.slane %v402_v46, 1  ;;  %v411_v0 = vadd.f32 %v410_v47, %v409_v44 }
 0x302   :  { %v404_v49 = vadd.f32 %v403_v48, %v402_v46  ;;  %v412_v50 = vrot.slane %v411_v0, 1 }
 0x304   :  { %v405_v51 = vmul.f32 0.125, %v404_v49  ;;  %v413_v52 = vadd.f32 %v412_v50, %v411_v0 }
 0x306   :  { %v414_v53 = vmul.f32 0.125, %v413_v52  ;;  %v415_v54 = vmul.f32 %v405_v51, %v405_v51 }
 0x308   :  { %v416_v55 = vsub.f32 %v414_v53, %v415_v54 }
 0x30a   :  { %v417_v56 = vadd.f32 1e-05, %v416_v55 }
 0x30c   :  { %652 = vrsqrt.f32 %v417_v56 }
 0x319   :  { %v653_v57 = vpop.eup %652 }
 0x31a   :  { %v419_v58 = vmul.f32 %v653_v57, %v878_v36 }
 0x31c   :  { %v420_v60 = vmul.f32 %v419_v58, %v405_v51  ;;  %v428_v62 = vrot.slane %v419_v58, %v427_v59 }
 0x31e   :  { %v422_v61 = vrot.slane %v420_v60, 7  ;;  %v429_v2 = vmul.f32 %v428_v62, %v392_v32 }
 0x320   :  { %v424_v1 = vsub.f32 %v878_v36, %v422_v61 }
 0x322   :  { %v433_v3 = vrot.slane %v424_v1, %v432_v63 }
 0x324   :  { %v434_v4 = vadd.f32 %v433_v3, %v429_v2 }
 0x326   :  { %v435_v5 = vmax.f32 %v434_v4, 0.0 }
 0x328   :  { %v436_v6 = vpack.c.bf16 %v435_v5, %v435_v5 }
 0x32a   :  { %619 = vmatmul.mubr.msk.bf16.vlgmr.msra.gmra.mxu1 %vm125_vm1, %v436_v6 }
 0x3ea   :  { %v510_v9 = vpop.f32.mrf.mxu1 }
 0x3eb   :  { %v511_v10 = vadd.f32 %v510_v9, %v448_v8 }
 0x3ec   :  { %v620_v11 = vpop.f32.mrf.mxu1 }
 0x3ed   :  { %516 = vst [vmem:[#allocation11] sm:$0xff] %v511_v10 }
 0x3ee   :  { %v513_v12 = vpop.f32.mrf.mxu1 }
 0x3ef   :  { %765 = shalt.err (!%p762_p1)
}
 0x3f0   :  { %526 = dma.vmem_to_hbm [thread:$0]  %s524_s21, 128, %s918_s6, [#allocation4]   ;;  %v621_v35 = vpop.f32.mrf.mxu1 }
 0x3f1   :  { %780 = dma.done.wait [#allocation4], 128  }
 0x3f2   :  { %781 = vsyncadd [#allocation4], 4294967168 }
 0x3f3   :  { %530 = vsyncpa [#allocation3], 1 }
 0x3f4   :  { %531 = vsyncpa [#allocation6], 1 }
 0x3f5   :  { %532 = vsyncpa [#allocation9], 1 }
 0x3f6   :  { %533 = vsyncpa [#allocation4], 1 }

</bundles_post_ra>
